<compile_context>
chip_gen: v7x
topology: tpu7x:2x2x1
jax: 0.10.0
libtpu: 0.0.40
codegen_flags: <defaults>
</compile_context>

<pallas_src>
import jax
import jax.numpy as jnp
from jax.experimental import pallas as pl
from jax.experimental.pallas import tpu as pltpu

EPS = 1e-7

# Below this element count the launch/grid/DMA overhead dwarfs the work; let
# XLA fuse the plain-jnp formulation into surrounding ops instead.
_SMALL_FALLBACK_ELEMS = 16 * 1024


def _normalize_jnp(x, power=2.0):
    """Pure-jnp reference / fallback (matches the torch module exactly)."""
    norm = jnp.power(jnp.sum(jnp.power(x, power), axis=1, keepdims=True),
                     1.0 / power)
    return x / (norm + EPS)


def _normalize_kernel(x_ref, o_ref):
    # x_ref / o_ref: (tile_n, C) block in VMEM.  power == 2 specialization:
    #   x*x (VALU) -> row-sum (XLU) -> sqrt + approx reciprocal (EUP, 1/row)
    #   -> broadcast multiply (VALU).  No per-element divide, no pow/exp/log.
    xf = x_ref[...].astype(jnp.float32)
    ssq = jnp.sum(xf * xf, axis=-1, keepdims=True)           # (tile_n, 1)
    inv = pl.reciprocal(jnp.sqrt(ssq) + EPS, approx=True)    # (tile_n, 1), EUP
    o_ref[...] = (xf * inv).astype(o_ref.dtype)


def _round_up(v, m):
    return ((v + m - 1) // m) * m


def _pick_tile_n(n_rows, n_cols, itemsize):
    """Pick a row tile: big enough to amortize per-grid-step overhead
    (~0.35 us), small enough to stay well inside v7x's 64 MiB VMEM, and
    leaving >= 2 grid steps so both v7x TensorCores get work."""
    sublane = 8 if itemsize >= 4 else (16 if itemsize == 2 else 32)
    # 2 input + 2 output double-buffers; keep the working set <= ~16 MiB
    # (safe under the 32 MiB scoped default on every generation).
    budget_bytes = 16 * 1024 * 1024
    max_rows = max(sublane, budget_bytes // (4 * n_cols * itemsize))
    tile = min(2048, max_rows, _round_up(n_rows, sublane))
    if n_rows > 2 * sublane:
        # keep grid length >= 2 (megacore / dual-TC sharding on v7x)
        tile = min(tile, _round_up(pl.cdiv(n_rows, 2), sublane))
    tile = max(sublane, (tile // sublane) * sublane)
    return tile


def normalize(x, *, power=2.0, tile_n=None):
    """Lp-normalize along dim=1 of a (N, C) array. Pallas kernel for p=2."""
    N, C = x.shape
    if power != 2.0 or N * C < _SMALL_FALLBACK_ELEMS:
        # TODO(synk): generic-p exponent and tiny inputs stay on plain XLA
        # (kernel specializes the module's default p=2 path).
        return _normalize_jnp(x, power)

    # TODO(synk): for C < 128 a lane-dense repack (group rows into 128-wide
    # lanes) would avoid masked stores; typical PatchSampleF C (256) is fine.
    itemsize = jnp.dtype(x.dtype).itemsize
    tile = tile_n if tile_n is not None else _pick_tile_n(N, C, itemsize)

    # Pad the row count up to a tile multiple; padded (all-zero) rows
    # normalize to zero and are sliced off afterwards, so they never alias
    # real data.
    n_pad = _round_up(N, tile)
    x_in = x if n_pad == N else jnp.pad(x, ((0, n_pad - N), (0, 0)))

    out = pl.pallas_call(
        _normalize_kernel,
        out_shape=jax.ShapeDtypeStruct((n_pad, C), x.dtype),
        grid_spec=pltpu.PrefetchScalarGridSpec(
            num_scalar_prefetch=0,
            grid=(n_pad // tile,),
            in_specs=[pl.BlockSpec((tile, C), lambda i: (i, 0))],
            out_specs=pl.BlockSpec((tile, C), lambda i: (i, 0)),
        ),
        compiler_params=pltpu.CompilerParams(
            dimension_semantics=("parallel",),
            vmem_limit_bytes=32 * 1024 * 1024,
        ),
        cost_estimate=pl.CostEstimate(
            flops=3 * N * C,
            transcendentals=2 * N,
            bytes_accessed=2 * N * C * itemsize,
        ),
    )(x_in)
    return out if n_pad == N else out[:N]


if __name__ == "__main__":
    # PatchSampleF-style flattened patch features: (num_patches, channels).
    key = jax.random.PRNGKey(0)

    # Case 1: lane-dense, tile-aligned.
    N1, C = 256, 256
    x1 = jax.random.normal(key, (N1, C), dtype=jnp.float32)
    out1 = jax.block_until_ready(normalize(x1))
    ref1 = _normalize_jnp(x1)
    assert out1.shape == ref1.shape and out1.dtype == ref1.dtype
    # approx reciprocal (EUP) contributes up to ~2^-12 relative error.
    assert jnp.allclose(out1, ref1, atol=1e-3, rtol=1e-3), "mismatch (case 1)"

    # Case 2: row count not a multiple of the tile (exercises the padded tail).
    N2 = 300
    x2 = jax.random.normal(jax.random.PRNGKey(1), (N2, C), dtype=jnp.float32)
    out2 = jax.block_until_ready(normalize(x2))
    ref2 = _normalize_jnp(x2)
    assert out2.shape == ref2.shape and out2.dtype == ref2.dtype
    assert jnp.allclose(out2, ref2, atol=1e-3, rtol=1e-3), "mismatch (case 2)"

    print("KERNEL_OK")
</pallas_src>

<mosaic_0001>
module attributes {stable_mosaic.version = 11 : i64} {
  func.func @_normalize_kernel(%arg0: i32, %arg1: memref<128x256xf32, #tpu.memory_space<vmem>>, %arg2: memref<128x256xf32, #tpu.memory_space<vmem>>) attributes {dimension_semantics = [#tpu.dimension_semantics<parallel>], iteration_bounds = array<i64: 2>, scalar_prefetch = 0 : i64, scratch_operands = 0 : i64, tpu.core_type = #tpu.core_type<tc>, window_params = [{transform_indices = @transform_0, window_bounds = array<i64: 128, 256>}, {transform_indices = @transform_1, window_bounds = array<i64: 128, 256>}]} {
    %c0 = arith.constant 0 : index
    %c0_0 = arith.constant 0 : index
    %0 = vector.load %arg1[%c0, %c0_0] : memref<128x256xf32, #tpu.memory_space<vmem>>, vector<128x256xf32>
    %1 = arith.mulf %0, %0 : vector<128x256xf32>
    %cst = arith.constant dense<0.000000e+00> : vector<128xf32>
    %2 = vector.multi_reduction <add>, %1, %cst [1] : vector<128x256xf32> to vector<128xf32>
    %3 = vector.shape_cast %2 : vector<128xf32> to vector<128x1xf32>
    %4 = math.sqrt %3 : vector<128x1xf32>
    %cst_1 = arith.constant 1.000000e-07 : f32
    %5 = vector.broadcast %cst_1 : f32 to vector<128x1xf32>
    %6 = arith.addf %4, %5 : vector<128x1xf32>
    %7 = tpu.reciprocal %6 {approx = true} : vector<128x1xf32> -> vector<128x1xf32>
    %8 = vector.broadcast %7 : vector<128x1xf32> to vector<128x256xf32>
    %9 = arith.mulf %0, %8 : vector<128x256xf32>
    %c0_2 = arith.constant 0 : index
    %c0_3 = arith.constant 0 : index
    %10 = vector.load %arg2[%c0_2, %c0_3] : memref<128x256xf32, #tpu.memory_space<vmem>>, vector<128x256xf32>
    tpu.vector_store %arg2[%c0_2, %c0_3], %9 {strides = array<i32>} : memref<128x256xf32, #tpu.memory_space<vmem>>, vector<128x256xf32>,
    return
  }
  func.func @transform_0(%arg0: i32) -> (i32, i32) {
    %c0_i32 = arith.constant 0 : i32
    %c0_i32_0 = arith.constant 0 : i32
    return %arg0, %c0_i32 : i32, i32
  }
  func.func @transform_1(%arg0: i32) -> (i32, i32) {
    %c0_i32 = arith.constant 0 : i32
    %c0_i32_0 = arith.constant 0 : i32
    return %arg0, %c0_i32 : i32, i32
  }
}

</mosaic_0001>

<bundles_post_ra>
// kernel: tpu_custom_call.1
= control target key start
LH: loop header
LB: loop body
LE: loop exit
PB: predicated region body
PF: predicated region fallthrough
CT: control target
= control target key end

     0   :  { %6 = vsyncpa [#allocation3], 0  ;;  %s1325_s0 = inlined_call_operand.hbm [shape: f32[256,256], index: 0, kind: input, shape index: {}]   ;;  %s1326_s1 = inlined_call_operand.hbm [shape: f32[256,256], index: 1, kind: output, shape index: {}]  }
   0x1   :  { %8 = vsyncpa [#allocation3 + $0x1], 0 }
   0x2   :  { %9 = vsyncpa [#allocation4], 0 }
   0x3   :  { %11 = vsyncpa [#allocation4 + $0x1], 0  ;;  %s794_s6 = smov 0   ;;  %s796_s7 = smov 0  }
   0x4   :  { %s798_s8 = smov 0   ;;  %s800_s9 = smov 0  }
   0x5 LB: > { %s815_s10 = sadd.s32 4294967295, %s776_s9   ;;  %s546_s11 = sadd.s32 4294967294, %s776_s9   ;;  %s776_s9 = sphi %s800_s9, %s1339_s9   ;;  %s772_s8 = sphi %s798_s8, %s1338_s8   ;;  %s768_s7 = sphi %s796_s7, %s1337_s7   ;;  %s764_s6 = sphi %s794_s6, %s1336_s6  }
   0x6   : > { %s819_s12 = sadd.s32 1, %s776_s9   ;;  %s24_s13 = sadd.s32 1, %s772_s8 }
   0x7   : > { %s21_s14 = ssub.s32 %s776_s9, %s819_s12  ;;  %p31_p0 = scmp.ne.s32.totalorder %s772_s8, %s768_s7 }
   0x8   : > { %p22_p1 = scmp.eq.s32.totalorder %s21_s14, 0  ;;  %p32_p2 = scmp.eq.s32.totalorder %s776_s9, 0 }
   0x9   : > { %p37_p3 = scmp.ne.s32.totalorder %s768_s7, %s764_s6  ;;  %p38_p4 = scmp.eq.s32.totalorder %s815_s10, 0 }
   0xa   : > { %s831_s15 = scalar_select %p22_p1, %s772_s8, %s24_s13  }
   0xb   : > { %p833_p5 = por %p32_p2, %p31_p0  ;;  %p837_p6 = por %p38_p4, %p37_p3 }
   0xc   : > { %p61_p7 = scmp.eq.s32.totalorder %s815_s10, 1  ;;  %p67_p8 = scmp.eq.s32.totalorder %s546_s11, 1 }
   0xd   : > { %p578_p10 = scmp.lt.s32.totalorder %s776_s9, 2  ;;  %s87_s20 = sand.u32 1, %s772_s8  }
   0xe   : > { %p844_p11 = por %p61_p7, %p31_p0  ;;  %p848_p12 = por %p67_p8, %p37_p3 }
   0xf   : > { %s563_s21 = sshll.u32 %s776_s9, 12  ;;  %s549_s22 = sshll.u32 %s87_s20, 8 }
  0x10   : > { %s1330_s18 = scalar_select %p844_p11, 1, 0 }
  0x11   : > { %s1331_s19 = scalar_select %p848_p12, 1, 0 }
  0x12   : > { %s857_s25 = scalar_lea.hbm %s1325_s0, %s563_s21  ;;  %s91_s26 = scalar_lea.vmem [#allocation2], %s549_s22 }
  0x13   : > { %s99_s27 = sshll.u32 %s91_s26, 4  ;;  %p861_p13 = pnand %p578_p10, %p833_p5  ;;  %s865_s27 = int_to_ptr.vmem [resolvable:$true] %s99_s27 }
  0x14   : > { %s867_s29 = scalar_lea.sflag [#allocation3], %s87_s20  ;;  %s680_s30 = scalar_lea.hbm %s857_s25, 4096 }
  0x15   : > { %p681_p0 = scmp.ne.s32.totalorder %s857_s25, %s680_s30  ;;  %p682_p1 = pneg %p861_p13 }
  0x16   : > { %s685_s4 = scalar_lea.hbm %s1325_s0, 8192  ;;  %p686_p4 = scmp.lt.u32.totalorder %s857_s25, %s1325_s0 }
  0x17   : > { %p683_p2 = pnand %p682_p1, %p681_p0  ;;  %p687_p5 = scmp.lt.u32.totalorder %s685_s4, %s680_s30 }
  0x18   : > { %p689_p8 = scmp.lt.u32.totalorder %s680_s30, %s857_s25 }
  0x19   : > { %p684_p3 = pneg %p683_p2  ;;  %p688_p7 = por %p687_p5, %p686_p4 }
  0x1b   : > { %p690_p10 = por %p689_p8, %p688_p7 }
  0x1d   : > { %p691_p9 = pnand %p690_p10, %p684_p3 }
  0x1f   : > { %694 = shalt.err (!%p691_p9)
}
  0x20   : > { %s695_s13 = scalar_lea.vmem %s865_s27, 4096  ;;  %s778_s14 = smov [#allocation2]  }
  0x21   : > { %p696_p0 = scmp.ne.s32.totalorder %s865_s27, %s695_s13  ;;  %s700_s16 = sshll.u32 %s778_s14, 4  ;;  %s701_s16 = int_to_ptr.vmem [resolvable:$false] %s700_s16 }
  0x22   : > { %s702_s20 = scalar_lea.vmem %s701_s16, 8192  ;;  %p703_p11 = scmp.lt.s32.totalorder %s865_s27, %s701_s16 }
  0x23   : > { %p698_p2 = pnand %p696_p0, %p682_p1  ;;  %p704_p4 = scmp.lt.s32.totalorder %s702_s20, %s695_s13 }
  0x25   : > { %p699_p12 = pneg %p698_p2  ;;  %p705_p5 = por %p704_p4, %p703_p11 }
  0x27   : > { %p706_p7 = pnand %p705_p5, %p699_p12 }
  0x29   : > { %709 = shalt.err (!%p706_p7)
}
  0x2a   : > { %s779_s21 = smov 256   ;;  %s780_s22 = smov 16  }
  0x2b   : > { %573 = dma.hbm_to_vmem [thread:$0]  (!%p861_p13), %s857_s25, 4096, %s865_s27, %s867_s29, %s779_s21, %s779_s21, %s780_s22  }
  0x2c   : > { %p553_p9 = scmp.ge.s32.totalorder %s776_s9, 1  ;;  %p107_p1 = scmp.lt.s32.totalorder %s776_s9, 3 }
  0x2e   : > { %p108_p3 = pnand %p553_p9, %p107_p1 }
  0x2f   : > { %s898_s23 = sand.u32 (!%p108_p3), 1, %s768_s7  }
  0x30   : > { %111 = sbr.rel (%p108_p3) target bundleno = 283 (0x11b), region = 24  ;;  %s554_s24 = sshll.u32 (!%p108_p3), %s898_s23, 8 }
  0x31   : > { %s114_s26 = scalar_lea.sflag (!%p108_p3), [#allocation3], %s898_s23  ;;  %s904_s30 = scalar_lea.vmem (!%p108_p3), [#allocation2], %s554_s24 }
  0x37   : > { %755 = dma.done.wait (%p837_p6), %s114_s26, 4096  }
  0x38   : > { %757 = vsyncadd (%p837_p6), %s114_s26, 4294963200  ;;  %v911_v0 = vld [vmem:[%s904_s30 + $0x20] sm:$0xff]  ;;  %v914_v1 = vld [vmem:[%s904_s30 + $0x28] sm:$0xff]  ;;  %s1158_s17 = scalar_lea.vmem [#allocation5], %s554_s24  ;;  %s565_s25 = sshll.u32 %s815_s10, 12 }
  0x39   : > { %v917_v2 = vld [vmem:[%s904_s30] sm:$0xff]  ;;  %v174_v3 = vmul.f32 %v911_v0, %v911_v0  ;;  %v175_v4 = vmul.f32 %v914_v1, %v914_v1  ;;  %v924_v5 = vld [vmem:[%s904_s30 + $0x8] sm:$0xff]  ;;  %v929_v7 = vld [vmem:[%s904_s30 + $0x30] sm:$0xff]  ;;  %s473_s27 = sshll.u32 %s1158_s17, 4  ;;  %s1273_s2 = scalar_lea.hbm %s1326_s1, %s565_s25  ;;  %s1275_s27 = int_to_ptr.vmem [resolvable:$true] %s473_s27 }
  0x3a   : > { %v170_v6 = vmul.f32 %v917_v2, %v917_v2  ;;  %v932_v8 = vld [vmem:[%s904_s30 + $0x38] sm:$0xff]  ;;  %v171_v9 = vmul.f32 %v924_v5, %v924_v5  ;;  %v176_v10 = vmul.f32 %v929_v7, %v929_v7  ;;  %v941_v12 = vld [vmem:[%s904_s30 + $0x10] sm:$0xff]  ;;  %v957_v19 = vld [vmem:[%s904_s30 + $0x40] sm:$0xff]  ;;  %s459_s10 = scalar_lea.sflag [#allocation4], %s898_s23  ;;  %s710_s3 = scalar_lea.vmem %s1275_s27, 4096 }
  0x3b   : > { %v177_v11 = vmul.f32 %v932_v8, %v932_v8  ;;  %v944_v13 = vld [vmem:[%s904_s30 + $0x18] sm:$0xff]  ;;  %v947_v14 = vld [vmem:[%s904_s30 + $0x50] sm:$0xff]  ;;  %v208_v15 = vadd.f32 %v175_v4, %v174_v3  ;;  %v172_v16 = vmul.f32 %v941_v12, %v941_v12  ;;  %v960_v20 = vld [vmem:[%s904_s30 + $0x48] sm:$0xff]  ;;  %v178_v26 = vmul.f32 %v957_v19, %v957_v19  ;;  %p711_p6 = scmp.ne.s32.totalorder %s1275_s27, %s710_s3  ;;  %p1333_p11 = scmp.ne.s32.totalorder %s1330_s18, 0 }
  0x3c   : > { %v173_v17 = vmul.f32 %v944_v13, %v944_v13  ;;  %v954_v18 = vld [vmem:[%s904_s30 + $0x58] sm:$0xff]  ;;  %v202_v21 = vadd.f32 %v171_v9, %v170_v6  ;;  %v180_v23 = vmul.f32 %v947_v14, %v947_v14  ;;  %v179_v27 = vmul.f32 %v960_v20, %v960_v20  ;;  %v971_v28 = vld [vmem:[%s904_s30 + $0x70] sm:$0xff]  ;;  %v977_v30 = vld [vmem:[%s904_s30 + $0x60] sm:$0xff]  ;;  %s781_s4 = smov [#allocation5]  }
  0x3d   : > { %209 = vadd.xlane.f32.xlu1 %v208_v15  ;;  %v211_v22 = vadd.f32 %v177_v11, %v176_v10  ;;  %v181_v24 = vmul.f32 %v954_v18, %v954_v18  ;;  %v974_v29 = vld [vmem:[%s904_s30 + $0x78] sm:$0xff]  ;;  %v980_v31 = vld [vmem:[%s904_s30 + $0x68] sm:$0xff]  ;;  %v184_v33 = vmul.f32 %v971_v28, %v971_v28  ;;  %v182_v36 = vmul.f32 %v977_v30, %v977_v30  ;;  %v991_v38 = vld [vmem:[%s904_s30 + $0x90] sm:$0xff]  ;;  %p712_p12 = pnand %p711_p6, %p1333_p11  ;;  %s714_s5 = sshll.u32 %s781_s4, 4  ;;  %s715_s5 = int_to_ptr.vmem [resolvable:$false] %s714_s5 }
  0x3e   : > { %203 = vadd.xlane.f32.xlu0 %v202_v21  ;;  %v205_v25 = vadd.f32 %v173_v17, %v172_v16  ;;  %v185_v34 = vmul.f32 %v974_v29, %v974_v29  ;;  %v214_v35 = vadd.f32 %v179_v27, %v178_v26  ;;  %v183_v37 = vmul.f32 %v980_v31, %v980_v31  ;;  %v994_v39 = vld [vmem:[%s904_s30 + $0x98] sm:$0xff]  ;;  %v997_v40 = vld [vmem:[%s904_s30 + $0x80] sm:$0xff]  ;;  %v1000_v41 = vld [vmem:[%s904_s30 + $0x88] sm:$0xff]  ;;  %s716_s11 = scalar_lea.vmem %s715_s5, 8192  ;;  %p717_p8 = scmp.lt.s32.totalorder %s1275_s27, %s715_s5 }
  0x3f   : > { %v217_v32 = vadd.f32 %v181_v24, %v180_v23  ;;  %v188_v43 = vmul.f32 %v991_v38, %v991_v38  ;;  %v189_v44 = vmul.f32 %v994_v39, %v994_v39  ;;  %v186_v46 = vmul.f32 %v997_v40, %v997_v40  ;;  %v1011_v48 = vld [vmem:[%s904_s30 + $0xb0] sm:$0xff]  ;;  %v1014_v49 = vld [vmem:[%s904_s30 + $0xb8] sm:$0xff]  ;;  %v1017_v50 = vld [vmem:[%s904_s30 + $0xa0] sm:$0xff]  ;;  %p713_p13 = pneg %p712_p12  ;;  %p718_p10 = scmp.lt.s32.totalorder %s716_s11, %s710_s3 }
  0x40   : > { %v223_v42 = vadd.f32 %v185_v34, %v184_v33  ;;  %v220_v45 = vadd.f32 %v183_v37, %v182_v36  ;;  %v187_v47 = vmul.f32 %v1000_v41, %v1000_v41  ;;  %v1020_v51 = vld [vmem:[%s904_s30 + $0xa8] sm:$0xff]  ;;  %v192_v53 = vmul.f32 %v1011_v48, %v1011_v48  ;;  %v1031_v58 = vld [vmem:[%s904_s30 + $0xd0] sm:$0xff]  ;;  %v1034_v59 = vld [vmem:[%s904_s30 + $0xd8] sm:$0xff] }
  0x41   : > { %212 = vadd.xlane.f32.xlu1 %v211_v22  ;;  %v229_v52 = vadd.f32 %v189_v44, %v188_v43  ;;  %v193_v54 = vmul.f32 %v1014_v49, %v1014_v49  ;;  %v190_v56 = vmul.f32 %v1017_v50, %v1017_v50  ;;  %v191_v57 = vmul.f32 %v1020_v51, %v1020_v51  ;;  %v1037_v60 = vld [vmem:[%s904_s30 + $0xc0] sm:$0xff]  ;;  %v1040_v61 = vld [vmem:[%s904_s30 + $0xc8] sm:$0xff]  ;;  %v1051_v10 = vld [vmem:[%s904_s30 + $0xf0] sm:$0xff]  ;;  %p719_p0 = por %p718_p10, %p717_p8 }
  0x42   : > { %206 = vadd.xlane.f32.xlu0 %v205_v25  ;;  %v226_v55 = vadd.f32 %v187_v47, %v186_v46  ;;  %v196_v63 = vmul.f32 %v1031_v58, %v1031_v58  ;;  %v197_v3 = vmul.f32 %v1034_v59, %v1034_v59  ;;  %v194_v6 = vmul.f32 %v1037_v60, %v1037_v60  ;;  %v1054_v11 = vld [vmem:[%s904_s30 + $0xf8] sm:$0xff]  ;;  %v1057_v15 = vld [vmem:[%s904_s30 + $0xe0] sm:$0xff]  ;;  %v1060_v16 = vld [vmem:[%s904_s30 + $0xe8] sm:$0xff] }
  0x43   : > { %v235_v62 = vadd.f32 %v193_v54, %v192_v53  ;;  %v232_v4 = vadd.f32 %v191_v57, %v190_v56  ;;  %v195_v9 = vmul.f32 %v1040_v61, %v1040_v61  ;;  %v200_v21 = vmul.f32 %v1051_v10, %v1051_v10  ;;  %p720_p2 = pnand %p719_p0, %p713_p13 }
  0x44   : > { %v241_v17 = vadd.f32 %v197_v3, %v196_v63  ;;  %v201_v22 = vmul.f32 %v1054_v11, %v1054_v11  ;;  %v198_v24 = vmul.f32 %v1057_v15, %v1057_v15  ;;  %v199_v25 = vmul.f32 %v1060_v16, %v1060_v16 }
  0x45   : > { %218 = vadd.xlane.f32.xlu1 %v217_v32  ;;  %v238_v23 = vadd.f32 %v195_v9, %v194_v6 }
  0x46   : > { %215 = vadd.xlane.f32.xlu0 %v214_v35  ;;  %v247_v26 = vadd.f32 %v201_v22, %v200_v21  ;;  %v244_v27 = vadd.f32 %v199_v25, %v198_v24 }
  0x49   : > { %224 = vadd.xlane.f32.xlu1 %v223_v42 }
  0x4a   : > { %221 = vadd.xlane.f32.xlu0 %v220_v45 }
  0x4d   : > { %230 = vadd.xlane.f32.xlu1 %v229_v52 }
  0x4e   : > { %227 = vadd.xlane.f32.xlu0 %v226_v55 }
  0x51   : > { %236 = vadd.xlane.f32.xlu1 %v235_v62 }
  0x52   : > { %233 = vadd.xlane.f32.xlu0 %v232_v4 }
  0x55   : > { %242 = vadd.xlane.f32.xlu1 %v241_v17 }
  0x56   : > { %239 = vadd.xlane.f32.xlu0 %v238_v23 }
  0x59   : > { %248 = vadd.xlane.f32.xlu1 %v247_v26 }
  0x5a   : > { %245 = vadd.xlane.f32.xlu0 %v244_v27 }
  0xca   : > { %v210_v32 = vpop.xlane.xlu1 %209 }
  0xcb   : > { %616 = vrsqrt.f32 %v210_v32  ;;  %v204_v33 = vpop.xlane.xlu0 %203  ;;  %vm266_vm0 = vcmp.eq.f32.partialorder %v210_v32, inf  ;;  %vm268_vm1 = vcmp.eq.f32.partialorder %v210_v32, 0.0  ;;  %v269_v43 = vand.u32 2147483648, %v210_v32 }
  0xcc   : > { %618 = vrsqrt.f32 %v204_v33  ;;  %vm252_vm2 = vcmp.eq.f32.partialorder %v204_v33, inf  ;;  %vm254_vm3 = vcmp.eq.f32.partialorder %v204_v33, 0.0  ;;  %v255_v46 = vand.u32 2147483648, %v204_v33 }
  0xce   : > { %v213_v34 = vpop.xlane.xlu1 %212 }
  0xcf   : > { %620 = vrsqrt.f32 %v213_v34  ;;  %v207_v35 = vpop.xlane.xlu0 %206  ;;  %vm273_vm4 = vcmp.eq.f32.partialorder %v213_v34, inf  ;;  %vm275_vm5 = vcmp.eq.f32.partialorder %v213_v34, 0.0  ;;  %v276_v53 = vand.u32 2147483648, %v213_v34 }
  0xd0   : > { %622 = vrsqrt.f32 %v207_v35  ;;  %vm259_vm6 = vcmp.eq.f32.partialorder %v207_v35, inf  ;;  %vm261_vm7 = vcmp.eq.f32.partialorder %v207_v35, 0.0  ;;  %v262_v56 = vand.u32 2147483648, %v207_v35 }
  0xd2   : > { %v1070_v36 = vpop.xlane.xlu1 %218 }
  0xd3   : > { %624 = vrsqrt.f32 %v1070_v36  ;;  %v1073_v37 = vpop.xlane.xlu0 %215  ;;  %vm287_vm8 = vcmp.eq.f32.partialorder %v1070_v36, inf  ;;  %vm289_vm9 = vcmp.eq.f32.partialorder %v1070_v36, 0.0  ;;  %v290_v17 = vand.u32 2147483648, %v1070_v36 }
  0xd4   : > { %626 = vrsqrt.f32 %v1073_v37  ;;  %vm280_vm10 = vcmp.eq.f32.partialorder %v1073_v37, inf  ;;  %vm282_vm11 = vcmp.eq.f32.partialorder %v1073_v37, 0.0  ;;  %v283_v26 = vand.u32 2147483648, %v1073_v37 }
  0xd5   : > { %v617_v42 = vpop.eup %616 }
  0xd6   : > { %v619_v44 = vpop.eup %618  ;;  %v265_v45 = vmul.f32 %v617_v42, %v210_v32  ;;  %v1076_v47 = vpop.xlane.xlu1 %224 }
  0xd7   : > { %v251_v52 = vmul.f32 %v619_v44, %v204_v33  ;;  %628 = vrsqrt.f32 %v1076_v47  ;;  %v1079_v54 = vpop.xlane.xlu0 %221  ;;  %vm301_vm12 = vcmp.eq.f32.partialorder %v1076_v47, inf  ;;  %vm303_vm13 = vcmp.eq.f32.partialorder %v1076_v47, 0.0 }
  0xd8   : > { %v267_v55 = vsel %vm266_vm0, %v210_v32, %v265_v45  ;;  %630 = vrsqrt.f32 %v1079_v54  ;;  %vm294_vm14 = vcmp.eq.f32.partialorder %v1079_v54, inf  ;;  %vm296_vm15 = vcmp.eq.f32.partialorder %v1079_v54, 0.0 }
  0xd9   : > { %v621_v57 = vpop.eup %620  ;;  %v270_v62 = vsel %vm268_vm1, %v269_v43, %v267_v55  ;;  %v253_v63 = vsel %vm252_vm2, %v204_v33, %v251_v52 }
  0xda   : > { %v623_v3 = vpop.eup %622  ;;  %v364_v4 = vadd.f32 1e-07, %v270_v62  ;;  %v256_v6 = vsel %vm254_vm3, %v255_v46, %v253_v63  ;;  %v272_v9 = vmul.f32 %v621_v57, %v213_v34  ;;  %v1089_v21 = vpop.xlane.xlu1 %230  ;;  %v297_v63 = vand.u32 2147483648, %v1079_v54 }
  0xdb   : > { %v362_v22 = vadd.f32 1e-07, %v256_v6  ;;  %v258_v23 = vmul.f32 %v623_v3, %v207_v35  ;;  %632 = vrsqrt.f32 %v1089_v21  ;;  %v1093_v24 = vpop.xlane.xlu0 %227  ;;  %vm315_vm0 = vcmp.eq.f32.partialorder %v1089_v21, inf }
  0xdc   : > { %634 = vrcp.f32 %v364_v4  ;;  %v274_v25 = vsel %vm273_vm4, %v213_v34, %v272_v9  ;;  %v304_v34 = vand.u32 2147483648, %v1076_v47  ;;  %vm317_vm1 = vcmp.eq.f32.partialorder %v1089_v21, 0.0 }
  0xdd   : > { %v625_v27 = vpop.eup %624  ;;  %636 = vrcp.f32 %v362_v22  ;;  %v277_v32 = vsel %vm275_vm5, %v276_v53, %v274_v25  ;;  %v260_v33 = vsel %vm259_vm6, %v207_v35, %v258_v23  ;;  %vm308_vm2 = vcmp.eq.f32.partialorder %v1093_v24, inf }
  0xde   : > { %v627_v42 = vpop.eup %626  ;;  %v365_v43 = vadd.f32 1e-07, %v277_v32  ;;  %v263_v44 = vsel %vm261_vm7, %v262_v56, %v260_v33  ;;  %v286_v45 = vmul.f32 %v625_v27, %v1070_v36  ;;  %638 = vrsqrt.f32 %v1093_v24  ;;  %v1104_v46 = vpop.xlane.xlu1 %236 }
  0xdf   : > { %v363_v52 = vadd.f32 1e-07, %v263_v44  ;;  %v279_v55 = vmul.f32 %v627_v42, %v1073_v37  ;;  %v1109_v53 = vpop.xlane.xlu0 %233  ;;  %vm310_vm3 = vcmp.eq.f32.partialorder %v1093_v24, 0.0  ;;  %vm329_vm4 = vcmp.eq.f32.partialorder %v1104_v46, inf }
  0xe0   : > { %640 = vrcp.f32 %v365_v43  ;;  %v288_v35 = vsel %vm287_vm8, %v1070_v36, %v286_v45  ;;  %vm331_vm5 = vcmp.eq.f32.partialorder %v1104_v46, 0.0  ;;  %vm322_vm6 = vcmp.eq.f32.partialorder %v1109_v53, inf }
  0xe1   : > { %v629_v56 = vpop.eup %628  ;;  %642 = vrcp.f32 %v363_v52  ;;  %v291_v57 = vsel %vm289_vm9, %v290_v17, %v288_v35  ;;  %v281_v62 = vsel %vm280_vm10, %v1073_v37, %v279_v55  ;;  %v318_v37 = vand.u32 2147483648, %v1089_v21 }
  0xe2   : > { %v631_v3 = vpop.eup %630  ;;  %v367_v4 = vadd.f32 1e-07, %v291_v57  ;;  %v284_v6 = vsel %vm282_vm11, %v283_v26, %v281_v62  ;;  %v300_v9 = vmul.f32 %v629_v56, %v1076_v47  ;;  %644 = vrsqrt.f32 %v1104_v46  ;;  %v1129_v36 = vpop.xlane.xlu1 %242 }
  0xe3   : > { %v366_v22 = vadd.f32 1e-07, %v284_v6  ;;  %v293_v23 = vmul.f32 %v631_v3, %v1079_v54  ;;  %646 = vrsqrt.f32 %v1109_v53  ;;  %v1142_v32 = vpop.xlane.xlu0 %239  ;;  %v332_v6 = vand.u32 2147483648, %v1104_v46 }
  0xe4   : > { %648 = vrcp.f32 %v367_v4  ;;  %v302_v17 = vsel %vm301_vm12, %v1076_v47, %v300_v9  ;;  %vm324_vm7 = vcmp.eq.f32.partialorder %v1109_v53, 0.0  ;;  %vm343_vm8 = vcmp.eq.f32.partialorder %v1129_v36, inf }
  0xe5   : > { %v633_v25 = vpop.eup %632  ;;  %650 = vrcp.f32 %v366_v22  ;;  %v305_v26 = vsel %vm303_vm13, %v304_v34, %v302_v17  ;;  %v295_v27 = vsel %vm294_vm14, %v1079_v54, %v293_v23  ;;  %vm345_vm9 = vcmp.eq.f32.partialorder %v1129_v36, 0.0 }
  0xe6   : > { %v635_v33 = vpop.eup %634  ;;  %v369_v42 = vadd.f32 1e-07, %v305_v26  ;;  %v298_v43 = vsel %vm296_vm15, %v297_v63, %v295_v27  ;;  %v314_v44 = vmul.f32 %v633_v25, %v1089_v21  ;;  %652 = vrsqrt.f32 %v1129_v36  ;;  %v1171_v62 = vpop.xlane.xlu1 %248 }
  0xe7   : > { %v637_v47 = vpop.eup %636  ;;  %v398_v45 = vmul.f32 %v635_v33, %v911_v0  ;;  %v399_v52 = vmul.f32 %v635_v33, %v914_v1  ;;  %v368_v55 = vadd.f32 1e-07, %v298_v43  ;;  %v1179_v9 = vpop.xlane.xlu0 %245  ;;  %vm336_vm10 = vcmp.eq.f32.partialorder %v1142_v32, inf }
  0xe8   : > { %v639_v34 = vpop.eup %638  ;;  %v394_v35 = vmul.f32 %v637_v47, %v917_v2  ;;  %v395_v56 = vmul.f32 %v637_v47, %v924_v5  ;;  %654 = vrcp.f32 %v369_v42  ;;  %v316_v54 = vsel %vm315_vm0, %v1089_v21, %v314_v44 }
  0xe9   : > { %430 = vst [vmem:[%s1158_s17 + $0x20] sm:$0xff] %v398_v45  ;;  %431 = vst [vmem:[%s1158_s17 + $0x28] sm:$0xff] %v399_v52  ;;  %656 = vrcp.f32 %v368_v55  ;;  %v319_v0 = vsel %vm317_vm1, %v318_v37, %v316_v54  ;;  %v307_v1 = vmul.f32 %v639_v34, %v1093_v24  ;;  %v311_v2 = vand.u32 2147483648, %v1093_v24 }
  0xea   : > { %v641_v5 = vpop.eup %640  ;;  %426 = vst [vmem:[%s1158_s17] sm:$0xff] %v394_v35  ;;  %427 = vst [vmem:[%s1158_s17 + $0x8] sm:$0xff] %v395_v56  ;;  %v371_v57 = vadd.f32 1e-07, %v319_v0  ;;  %658 = vrsqrt.f32 %v1142_v32  ;;  %vm338_vm11 = vcmp.eq.f32.partialorder %v1142_v32, 0.0  ;;  %vm357_vm12 = vcmp.eq.f32.partialorder %v1171_v62, inf }
  0xeb   : > { %v643_v21 = vpop.eup %642  ;;  %v400_v63 = vmul.f32 %v641_v5, %v929_v7  ;;  %v401_v3 = vmul.f32 %v641_v5, %v932_v8  ;;  %v309_v4 = vsel %vm308_vm2, %v1093_v24, %v307_v1  ;;  %vm359_vm13 = vcmp.eq.f32.partialorder %v1171_v62, 0.0 }
  0xec   : > { %v645_v22 = vpop.eup %644  ;;  %v396_v23 = vmul.f32 %v643_v21, %v941_v12  ;;  %v397_v17 = vmul.f32 %v643_v21, %v944_v13  ;;  %660 = vrcp.f32 %v371_v57  ;;  %v312_v7 = vsel %vm310_vm3, %v311_v2, %v309_v4 }
  0xed   : > { %v647_v8 = vpop.eup %646  ;;  %432 = vst [vmem:[%s1158_s17 + $0x30] sm:$0xff] %v400_v63  ;;  %433 = vst [vmem:[%s1158_s17 + $0x38] sm:$0xff] %v401_v3  ;;  %v370_v37 = vadd.f32 1e-07, %v312_v7  ;;  %v328_v25 = vmul.f32 %v645_v22, %v1104_v46  ;;  %662 = vrsqrt.f32 %v1171_v62  ;;  %v325_v13 = vand.u32 2147483648, %v1109_v53 }
  0xee   : > { %v649_v26 = vpop.eup %648  ;;  %428 = vst [vmem:[%s1158_s17 + $0x10] sm:$0xff] %v396_v23  ;;  %429 = vst [vmem:[%s1158_s17 + $0x18] sm:$0xff] %v397_v17  ;;  %v321_v12 = vmul.f32 %v647_v8, %v1109_v53  ;;  %664 = vrsqrt.f32 %v1179_v9  ;;  %vm350_vm14 = vcmp.eq.f32.partialorder %v1179_v9, inf  ;;  %v353_v7 = vand.u32 2147483648, %v1179_v9 }
  0xef   : > { %v651_v24 = vpop.eup %650  ;;  %v404_v27 = vmul.f32 %v649_v26, %v947_v14  ;;  %v405_v33 = vmul.f32 %v649_v26, %v954_v18  ;;  %666 = vrcp.f32 %v370_v37  ;;  %v330_v42 = vsel %vm329_vm4, %v1104_v46, %v328_v25 }
  0xf0   : > { %v653_v43 = vpop.eup %652  ;;  %v402_v44 = vmul.f32 %v651_v24, %v957_v19  ;;  %v403_v47 = vmul.f32 %v651_v24, %v960_v20  ;;  %v333_v45 = vsel %vm331_vm5, %v332_v6, %v330_v42  ;;  %v323_v14 = vsel %vm322_vm6, %v1109_v53, %v321_v12 }
  0xf1   : > { %436 = vst [vmem:[%s1158_s17 + $0x50] sm:$0xff] %v404_v27  ;;  %437 = vst [vmem:[%s1158_s17 + $0x58] sm:$0xff] %v405_v33  ;;  %v373_v18 = vadd.f32 1e-07, %v333_v45  ;;  %v326_v52 = vsel %vm324_vm7, %v325_v13, %v323_v14  ;;  %v342_v55 = vmul.f32 %v653_v43, %v1129_v36  ;;  %v346_v20 = vand.u32 2147483648, %v1129_v36 }
  0xf2   : > { %v655_v34 = vpop.eup %654  ;;  %434 = vst [vmem:[%s1158_s17 + $0x40] sm:$0xff] %v402_v44  ;;  %435 = vst [vmem:[%s1158_s17 + $0x48] sm:$0xff] %v403_v47  ;;  %v372_v19 = vadd.f32 1e-07, %v326_v52  ;;  %vm352_vm15 = vcmp.eq.f32.partialorder %v1179_v9, 0.0 }
  0xf3   : > { %v657_v46 = vpop.eup %656  ;;  %v408_v53 = vmul.f32 %v655_v34, %v971_v28  ;;  %v409_v35 = vmul.f32 %v655_v34, %v974_v29  ;;  %668 = vrcp.f32 %v373_v18  ;;  %v344_v56 = vsel %vm343_vm8, %v1129_v36, %v342_v55 }
  0xf4   : > { %v659_v54 = vpop.eup %658  ;;  %v406_v0 = vmul.f32 %v657_v46, %v977_v30  ;;  %v407_v1 = vmul.f32 %v657_v46, %v980_v31  ;;  %670 = vrcp.f32 %v372_v19  ;;  %v347_v2 = vsel %vm345_vm9, %v346_v20, %v344_v56 }
  0xf5   : > { %440 = vst [vmem:[%s1158_s17 + $0x70] sm:$0xff] %v408_v53  ;;  %441 = vst [vmem:[%s1158_s17 + $0x78] sm:$0xff] %v409_v35  ;;  %v375_v5 = vadd.f32 1e-07, %v347_v2  ;;  %v335_v57 = vmul.f32 %v659_v54, %v1142_v32  ;;  %v339_v28 = vand.u32 2147483648, %v1142_v32 }
  0xf6   : > { %v661_v21 = vpop.eup %660  ;;  %438 = vst [vmem:[%s1158_s17 + $0x60] sm:$0xff] %v406_v0  ;;  %439 = vst [vmem:[%s1158_s17 + $0x68] sm:$0xff] %v407_v1 }
  0xf7   : > { %v663_v29 = vpop.eup %662  ;;  %v412_v30 = vmul.f32 %v661_v21, %v991_v38  ;;  %v413_v31 = vmul.f32 %v661_v21, %v994_v39  ;;  %672 = vrcp.f32 %v375_v5  ;;  %v337_v36 = vsel %vm336_vm10, %v1142_v32, %v335_v57 }
  0xf8   : > { %v665_v63 = vpop.eup %664  ;;  %v340_v3 = vsel %vm338_vm11, %v339_v28, %v337_v36  ;;  %v356_v4 = vmul.f32 %v663_v29, %v1171_v62  ;;  %v360_v38 = vand.u32 2147483648, %v1171_v62 }
  0xf9   : > { %v667_v6 = vpop.eup %666  ;;  %444 = vst [vmem:[%s1158_s17 + $0x90] sm:$0xff] %v412_v30  ;;  %445 = vst [vmem:[%s1158_s17 + $0x98] sm:$0xff] %v413_v31  ;;  %v374_v22 = vadd.f32 1e-07, %v340_v3  ;;  %v349_v39 = vmul.f32 %v665_v63, %v1179_v9 }
  0xfa   : > { %v410_v32 = vmul.f32 %v667_v6, %v997_v40  ;;  %v411_v23 = vmul.f32 %v667_v6, %v1000_v41  ;;  %v358_v17 = vsel %vm357_vm12, %v1171_v62, %v356_v4 }
  0xfb   : > { %674 = vrcp.f32 %v374_v22  ;;  %v361_v8 = vsel %vm359_vm13, %v360_v38, %v358_v17  ;;  %v351_v37 = vsel %vm350_vm14, %v1179_v9, %v349_v39 }
  0xfc   : > { %442 = vst [vmem:[%s1158_s17 + $0x80] sm:$0xff] %v410_v32  ;;  %443 = vst [vmem:[%s1158_s17 + $0x88] sm:$0xff] %v411_v23  ;;  %v377_v25 = vadd.f32 1e-07, %v361_v8  ;;  %v354_v40 = vsel %vm352_vm15, %v353_v7, %v351_v37 }
  0xfd   : > { %v669_v26 = vpop.eup %668  ;;  %v376_v41 = vadd.f32 1e-07, %v354_v40 }
  0xfe   : > { %v671_v62 = vpop.eup %670  ;;  %v416_v12 = vmul.f32 %v669_v26, %v1011_v48  ;;  %v417_v13 = vmul.f32 %v669_v26, %v1014_v49  ;;  %676 = vrcp.f32 %v377_v25 }
  0xff   : > { %v414_v24 = vmul.f32 %v671_v62, %v1017_v50  ;;  %v415_v9 = vmul.f32 %v671_v62, %v1020_v51  ;;  %678 = vrcp.f32 %v376_v41 }
 0x100   : > { %448 = vst [vmem:[%s1158_s17 + $0xb0] sm:$0xff] %v416_v12  ;;  %449 = vst [vmem:[%s1158_s17 + $0xb8] sm:$0xff] %v417_v13 }
 0x101   : > { %v673_v27 = vpop.eup %672  ;;  %446 = vst [vmem:[%s1158_s17 + $0xa0] sm:$0xff] %v414_v24  ;;  %447 = vst [vmem:[%s1158_s17 + $0xa8] sm:$0xff] %v415_v9 }
 0x102   : > { %v420_v33 = vmul.f32 %v673_v27, %v1031_v58  ;;  %v421_v48 = vmul.f32 %v673_v27, %v1034_v59 }
 0x104   : > { %452 = vst [vmem:[%s1158_s17 + $0xd0] sm:$0xff] %v420_v33  ;;  %453 = vst [vmem:[%s1158_s17 + $0xd8] sm:$0xff] %v421_v48 }
 0x105   : > { %v675_v49 = vpop.eup %674 }
 0x106   : > { %v418_v50 = vmul.f32 %v675_v49, %v1037_v60  ;;  %v419_v51 = vmul.f32 %v675_v49, %v1040_v61 }
 0x108   : > { %v677_v42 = vpop.eup %676  ;;  %450 = vst [vmem:[%s1158_s17 + $0xc0] sm:$0xff] %v418_v50  ;;  %451 = vst [vmem:[%s1158_s17 + $0xc8] sm:$0xff] %v419_v51 }
 0x109   : > { %v679_v58 = vpop.eup %678  ;;  %v424_v59 = vmul.f32 %v677_v42, %v1051_v10  ;;  %v425_v43 = vmul.f32 %v677_v42, %v1054_v11 }
 0x10a   : > { %v422_v60 = vmul.f32 %v679_v58, %v1057_v15  ;;  %v423_v61 = vmul.f32 %v679_v58, %v1060_v16 }
 0x10b   : > { %456 = vst [vmem:[%s1158_s17 + $0xf0] sm:$0xff] %v424_v59  ;;  %457 = vst [vmem:[%s1158_s17 + $0xf8] sm:$0xff] %v425_v43 }
 0x10c   : > { %454 = vst [vmem:[%s1158_s17 + $0xe0] sm:$0xff] %v422_v60  ;;  %455 = vst [vmem:[%s1158_s17 + $0xe8] sm:$0xff] %v423_v61 }
 0x10d   : > { %723 = shalt.err (!%p720_p2)
}
 0x10e   : > { %s724_s13 = scalar_lea.hbm %s1273_s2, 4096  ;;  %s728_s20 = scalar_lea.hbm %s1326_s1, 8192 }
 0x10f   : > { %p725_p4 = scmp.ne.s32.totalorder %s1273_s2, %s724_s13  ;;  %p729_p9 = scmp.lt.u32.totalorder %s1273_s2, %s1326_s1 }
 0x110   : > { %p730_p1 = scmp.lt.u32.totalorder %s728_s20, %s724_s13  ;;  %p732_p6 = scmp.lt.u32.totalorder %s724_s13, %s1273_s2 }
 0x111   : > { %p726_p5 = pnand %p725_p4, %p1333_p11 }
 0x112   : > { %p731_p3 = por %p730_p1, %p729_p9 }
 0x113   : > { %p727_p7 = pneg %p726_p5 }
 0x114   : > { %p733_p12 = por %p732_p6, %p731_p3 }
 0x116   : > { %p734_p13 = pnand %p733_p12, %p727_p7 }
 0x118   : > { %737 = shalt.err (!%p734_p13)
}
 0x119   : > { %s782_s24 = smov 256   ;;  %s783_s26 = smov 16  }
 0x11a   : > { %568 = dma.vmem_to_hbm [thread:$0]  (%p1333_p11), %s1275_s27, 4096, %s1273_s2, %s459_s10, %s782_s24, %s782_s24, %s783_s26  }
 0x11b PF: > { %s488_s30 = sand.u32 1, %s764_s6   ;;  %p1334_p8 = scmp.ne.s32.totalorder %s1331_s19, 0 }
 0x11c   : > { %p1335_p10 = scmp.ge.s32.totalorder %s776_s9, 2  ;;  %s489_s17 = scalar_lea.sflag [#allocation4], %s488_s30 }
 0x11e   : > { %p575_p0 = pnand %p1335_p10, %p1334_p8 }
 0x120   : > { %759 = dma.done.wait (!%p575_p0), %s489_s17, 4096  }
 0x121   : > { %761 = vsyncadd (!%p575_p0), %s489_s17, 4294963200  ;;  %p14_p2 = scmp.ge.s32.totalorder %s819_s12, 4   ;;  %s1336_s6 = smov %s768_s7 }
 0x122   : > { %s1337_s7 = smov %s772_s8  ;;  %s1338_s8 = smov %s831_s15 }
 0x123   : > { %s1339_s9 = smov %s819_s12  ;;  %16 = sbr.rel (!%p14_p2) target bundleno = 5 (0x5), region = 69 }
 0x12a   :  { %494 = vsyncpa [#allocation3], 1 }
 0x12b   :  { %496 = vsyncpa [#allocation3 + $0x1], 1 }
 0x12c   :  { %497 = vsyncpa [#allocation4], 1 }
 0x12d   :  { %499 = vsyncpa [#allocation4 + $0x1], 1 }

</bundles_post_ra>
